<compile_context>
chip_gen: v5e
topology: v5e:2x2
jax: 0.10.0
libtpu: 0.0.40
codegen_flags: <defaults>
</compile_context>

<pallas_src>
import jax
import jax.numpy as jnp
from jax.experimental import pallas as pl
from jax.experimental.pallas import tpu as pltpu


def linear_kernel(x_ref, w_ref, o_ref):
    # x_ref: (TM, D), w_ref: (D, OUT), o_ref: (TM, OUT)
    # Single MXU matmul per row tile; f32 accumulation, store in the consumer dtype.
    o_ref[...] = jnp.dot(
        x_ref[...], w_ref[...], preferred_element_type=jnp.float32
    ).astype(o_ref.dtype)


def _round_up(a: int, b: int) -> int:
    return pl.cdiv(a, b) * b


def _pick_row_tile(n_rows: int) -> int:
    """Generation-aware row tile, clamped to the (8-aligned) row count."""
    kind = ""
    try:
        kind = jax.devices()[0].device_kind.lower()
    except Exception:  # pragma: no cover - defensive, e.g. no devices yet
        pass

    if "v7" in kind:
        tm = 4096
    elif "v6" in kind:
        tm = 2048
    else:  # v5e / unknown
        tm = 1024

    # Clamp so tiny inputs are not blown up (tile stays a multiple of 8 sublanes).
    tm = min(tm, _round_up(n_rows, 8))

    # v7x has 2 TensorCores: when there is enough work, guarantee >=2 grid steps so the
    # "parallel" row axis actually spans both cores.
    if "v7" in kind and n_rows >= 1024:
        tm = min(tm, _round_up(pl.cdiv(n_rows, 2), 8))

    return max(tm, 8)


def linear_node_embedding_forward(node_attrs: jax.Array,
                                  weight: jax.Array,
                                  tm: int | None = None,
                                  out_dtype=None) -> jax.Array:
    """node_attrs: (N, in_features); weight: (in_features, out_features) -> (N, out)."""
    N, D = node_attrs.shape
    D2, OUT = weight.shape
    assert D == D2, "feature dims must match"

    if out_dtype is None:
        out_dtype = node_attrs.dtype
    if tm is None:
        tm = _pick_row_tile(N)
    tm = max(8, _round_up(min(tm, _round_up(N, 8)), 8))

    # e3nn o3.Linear normalization for scalar irreps: 1/sqrt(fan_in), folded into W
    # once (weight is tiny: D x OUT) so there is no per-tile scaling inside the kernel.
    w_norm = weight * jnp.asarray(1.0 / float(D) ** 0.5, dtype=weight.dtype)

    grid = (pl.cdiv(N, tm),)  # partial last tile handled by Pallas boundary masking

    return pl.pallas_call(
        linear_kernel,
        out_shape=jax.ShapeDtypeStruct((N, OUT), out_dtype),
        grid=grid,
        in_specs=[
            # tile over rows; feature dim full-extent (no padding, lane layout is legal)
            pl.BlockSpec((tm, D), lambda i: (i, 0)),
            # weight: same full block every grid step
            pl.BlockSpec((D, OUT), lambda i: (0, 0)),
        ],
        out_specs=pl.BlockSpec((tm, OUT), lambda i: (i, 0)),
        compiler_params=pltpu.CompilerParams(
            dimension_semantics=("parallel",)),
    )(node_attrs, w_norm)


def linear_node_embedding_reference(node_attrs, weight):
    return node_attrs @ (weight / jnp.sqrt(jnp.float32(weight.shape[0])))


if __name__ == "__main__":
    key = jax.random.PRNGKey(0)
    k_x, k_w = jax.random.split(key)

    NUM_NODES, IN_FEATURES, OUT_FEATURES = 32, 8, 32

    # node_attrs in MACE are one-hot element encodings.
    elems = jax.random.randint(k_x, (NUM_NODES,), 0, IN_FEATURES)
    node_attrs = jax.nn.one_hot(elems, IN_FEATURES, dtype=jnp.float32)

    # deterministic init of the module's parameter (o3.Linear weights ~ randn)
    weight = jax.random.normal(k_w, (IN_FEATURES, OUT_FEATURES), dtype=jnp.float32)

    out = linear_node_embedding_forward(node_attrs, weight)
    out = jax.block_until_ready(out)

    ref = linear_node_embedding_reference(node_attrs, weight)
    assert out.shape == (NUM_NODES, OUT_FEATURES)
    assert out.dtype == node_attrs.dtype
    assert jnp.allclose(out, ref, atol=1e-5, rtol=1e-5), "mismatch vs reference"

    print("KERNEL_OK")
</pallas_src>

<mosaic_0001>
module attributes {stable_mosaic.version = 11 : i64} {
  func.func @linear_kernel(%arg0: i32, %arg1: memref<32x8xf32, #tpu.memory_space<vmem>>, %arg2: memref<8x32xf32, #tpu.memory_space<vmem>>, %arg3: memref<32x32xf32, #tpu.memory_space<vmem>>) attributes {dimension_semantics = [#tpu.dimension_semantics<parallel>], iteration_bounds = array<i64: 1>, scalar_prefetch = 0 : i64, scratch_operands = 0 : i64, tpu.core_type = #tpu.core_type<tc>, window_params = [{transform_indices = @transform_0, window_bounds = array<i64: 32, 8>}, {pipeline_mode = #tpu.pipeline_mode<synchronous>, transform_indices = @transform_1, window_bounds = array<i64: 8, 32>}, {transform_indices = @transform_2, window_bounds = array<i64: 32, 32>}]} {
    %c0 = arith.constant 0 : index
    %c0_0 = arith.constant 0 : index
    %0 = vector.load %arg1[%c0, %c0_0] : memref<32x8xf32, #tpu.memory_space<vmem>>, vector<32x8xf32>
    %c0_1 = arith.constant 0 : index
    %c0_2 = arith.constant 0 : index
    %1 = vector.load %arg2[%c0_1, %c0_2] : memref<8x32xf32, #tpu.memory_space<vmem>>, vector<8x32xf32>
    %cst = arith.constant dense<0.000000e+00> : vector<32x32xf32>
    %2 = tpu.matmul %0, %1, %cst {dimension_numbers = #tpu.dot_dimension_numbers<[1], [0], [0], [1], [0, 0, 1, 1], [], []>} : vector<32x8xf32>, vector<8x32xf32>, vector<32x32xf32> -> vector<32x32xf32>
    %c0_3 = arith.constant 0 : index
    %c0_4 = arith.constant 0 : index
    %3 = vector.load %arg3[%c0_3, %c0_4] : memref<32x32xf32, #tpu.memory_space<vmem>>, vector<32x32xf32>
    tpu.vector_store %arg3[%c0_3, %c0_4], %2 {strides = array<i32>} : memref<32x32xf32, #tpu.memory_space<vmem>>, vector<32x32xf32>,
    return
  }
  func.func @transform_0(%arg0: i32) -> (i32, i32) {
    %c0_i32 = arith.constant 0 : i32
    %c0_i32_0 = arith.constant 0 : i32
    return %arg0, %c0_i32 : i32, i32
  }
  func.func @transform_1(%arg0: i32) -> (i32, i32) {
    %c0_i32 = arith.constant 0 : i32
    %c0_i32_0 = arith.constant 0 : i32
    %c0_i32_1 = arith.constant 0 : i32
    return %c0_i32, %c0_i32_0 : i32, i32
  }
  func.func @transform_2(%arg0: i32) -> (i32, i32) {
    %c0_i32 = arith.constant 0 : i32
    %c0_i32_0 = arith.constant 0 : i32
    return %arg0, %c0_i32 : i32, i32
  }
}

</mosaic_0001>

<bundles_post_ra>
// kernel: tpu_custom_call.1
= control target key start
LH: loop header
LB: loop body
LE: loop exit
PB: predicated region body
PF: predicated region fallthrough
CT: control target
= control target key end

     0   :  { %vm17_vm0 = vcmask 64512   ;;  %s154_s0 = inlined_call_operand.vmem [shape: f32[32,8], index: 0, kind: input, shape index: {}]   ;;  %s155_s1 = inlined_call_operand.vmem [shape: f32[8,32], index: 1, kind: input, shape index: {}]   ;;  %s156_s2 = inlined_call_operand.hbm [shape: f32[32,32], index: 2, kind: output, shape index: {}]  }
   0x1   :  { %v16_v0 = vld [vmem:[%s155_s1] sm:$0xff]  ;;  %v14_v1 = vld [vmem:[%s154_s0 + $0x10] sm:$0xff]  ;;  %v15_v2 = vld [vmem:[%s154_s0 + $0x18] sm:$0xff] }
   0x2   :  { %87 = vmatpush.msra.mxu2 %v16_v0  ;;  %88 = vmatpush.msra.mxu3 %v16_v0  ;;  %v12_v3 = vld [vmem:[%s154_s0] sm:$0xff]  ;;  %v13_v4 = vld [vmem:[%s154_s0 + $0x8] sm:$0xff] }
   0x3   :  { %7 = vsyncpa [#allocation3], 0  ;;  %84 = vmatmul.msk.f32.vlgmr.msra.gmra.mxu2 %vm17_vm0, %v14_v1  ;;  %85 = vmatmul.msk.f32.vlgmr.msra.gmra.mxu3 %vm17_vm0, %v15_v2  ;;  %vm59_vm1 = vcmask 261120   ;;  %s118_s1 = smov [#allocation2]   ;;  %s70_s22 = sshll.u32 %s156_s2, 4  ;;  %s71_s22 = int_to_ptr.hbm [resolvable:$true] %s70_s22 }
   0x4   :  { %45 = vmatpush.msra.mxu0 %v16_v0  ;;  %86 = vmatpush.msra.mxu1 %v16_v0  ;;  %s68_s19 = sshll.u32 %s118_s1, 4  ;;  %s119_s0 = smov 128   ;;  %s69_s19 = int_to_ptr.vmem [resolvable:$true] %s68_s19 }
   0x5   :  { %82 = vmatmul.msk.f32.vlgmr.msra.gmra.mxu0 %vm17_vm0, %v12_v3  ;;  %83 = vmatmul.msk.f32.vlgmr.msra.gmra.mxu1 %vm17_vm0, %v13_v4  ;;  %s120_s23 = smov 8  }
  0x82   :  { %v47_v5 = vpop.f32.mrf.mxu0  ;;  %v50_v6 = vpop.f32.mrf.mxu1 }
  0x83   :  { %60 = vst.msk [vmem:[#allocation2] sm:$0xff] %vm59_vm1, %v47_v5 }
  0x84   :  { %61 = vst.msk [vmem:[#allocation2 + $0x8] sm:$0xff] %vm59_vm1, %v50_v6 }
  0x86   :  { %v53_v7 = vpop.f32.mrf.mxu2  ;;  %v56_v8 = vpop.f32.mrf.mxu3 }
  0x87   :  { %62 = vst.msk [vmem:[#allocation2 + $0x10] sm:$0xff] %vm59_vm1, %v53_v7 }
  0x88   :  { %63 = vst.msk [vmem:[#allocation2 + $0x18] sm:$0xff] %vm59_vm1, %v56_v8 }
  0x89   :  { %76 = dma.vmem_to_hbm [thread:$0]  %s69_s19, 512, %s71_s22, [#allocation3], %s119_s0, %s119_s0, %s120_s23  }
  0x8a   :  { %116 = dma.done.wait [#allocation3], 512  }
  0x8b   :  { %117 = vsyncadd [#allocation3], 4294966784 }
  0x8c   :  { %81 = vsyncpa [#allocation3], 1 }

</bundles_post_ra>
